<compile_context>
chip_gen: v6e
topology: v6e:2x2x1
jax: 0.10.0
libtpu: 0.0.40
codegen_flags: <defaults>
</compile_context>

<pallas_src>
import functools

import jax
import jax.numpy as jnp
from jax.experimental import pallas as pl
from jax.experimental.pallas import tpu as pltpu

_LANE = 128      # vreg lane width
_SUBLANE = 8     # vreg sublane count (f32)


def _round_up(n, m):
    return ((n + m - 1) // m) * m


# ---------------------------------------------------------------------------
# Fused kernel: layer0 -> streamed hidden layers -> head Linear -> CE -> mix
# Grid: one step per LocalLossBlockMahi layer (sequential / "arbitrary").
# ---------------------------------------------------------------------------
def _make_fused_kernel(num_layers, batch, hidden_true, num_classes, has_stack):
    """True (unpadded) dims are baked in so padded columns never enter any
    reduction (padded W/b columns are exactly zero -> padded activations are
    exactly zero)."""

    def kernel(*refs):
        it = iter(refs)
        x_ref = next(it)                       # (B, Din)            bf16
        w0_ref = next(it)                      # (Din, H_pad)        bf16
        b0_ref = next(it)                      # (1, H_pad)          f32
        if has_stack:
            ws_ref = next(it)                  # (1, H_pad, H_pad)   bf16 (streamed)
            bs_ref = next(it)                  # (1, 1, H_pad)       f32  (streamed)
        wo_ref = next(it)                      # (H_pad, C_pad)      bf16
        bo_ref = next(it)                      # (1, C_pad)          f32
        y_ref = next(it)                       # (B, 1)              int32
        logits_ref = next(it)                  # (B, C_pad)          f32 out
        scal_ref = next(it)                    # (1, 128)            f32 out
        h_ref = next(it)                       # (B, H_pad)          bf16 scratch
        acc_ref = next(it)                     # (1,)                f32 SMEM scratch

        layer = pl.program_id(0)
        inv_n = 1.0 / float(batch * hidden_true)

        # ---- layer 0: x @ W0, ReLU, local loss -----------------------------
        @pl.when(layer == 0)
        def _():
            z = jnp.dot(x_ref[...], w0_ref[...],
                        preferred_element_type=jnp.float32) + b0_ref[...]
            a = jnp.maximum(z, 0.0)
            # TODO(synk): LocalLossBlockMahi's real local loss (prediction /
            # sim-matching) is not in the provided source; placeholder mean(h^2).
            acc_ref[0] = jnp.sum(a * a) * inv_n
            h_ref[...] = a.astype(jnp.bfloat16)     # carry activations in bf16

        # ---- layers 1..L-1: streamed hidden->hidden blocks -----------------
        if has_stack:
            @pl.when(layer > 0)
            def _():
                z = jnp.dot(h_ref[...], ws_ref[0],
                            preferred_element_type=jnp.float32) + bs_ref[0]
                a = jnp.maximum(z, 0.0)
                acc_ref[0] = acc_ref[0] + jnp.sum(a * a) * inv_n
                h_ref[...] = a.astype(jnp.bfloat16)

        # ---- last step: output head + cross-entropy + VDN mix --------------
        @pl.when(layer == num_layers - 1)
        def _():
            logits = jnp.dot(h_ref[...], wo_ref[...],
                             preferred_element_type=jnp.float32) + bo_ref[...]
            logits_ref[...] = logits                  # lane-dense (B, C_pad) store

            c_pad = logits.shape[-1]
            class_ids = jax.lax.broadcasted_iota(jnp.int32, (1, c_pad), 1)
            # CE over the TRUE classes only (mask padded logit columns).
            masked = jnp.where(class_ids < num_classes, logits, jnp.float32(-1e30))
            m = jnp.max(masked, axis=-1, keepdims=True)
            lse = m + jnp.log(jnp.sum(jnp.exp(masked - m), axis=-1, keepdims=True))
            pick = (class_ids == y_ref[...]).astype(jnp.float32)   # one-hot from labels
            picked = jnp.sum(logits * pick, axis=-1, keepdims=True)
            true_loss = jnp.sum(lse - picked) / jnp.float32(batch)

            local_loss = acc_ref[0]                   # VDNMixer == sum of layer losses
            mix_loss = (local_loss - true_loss) ** 2  # F.mse_loss on two scalars

            lane = jax.lax.broadcasted_iota(jnp.int32, (1, scal_ref.shape[-1]), 1)
            scal_ref[...] = (jnp.where(lane == 0, local_loss, 0.0)
                             + jnp.where(lane == 1, true_loss, 0.0)
                             + jnp.where(lane == 2, mix_loss, 0.0)
                             ).astype(jnp.float32)

    return kernel


# ---------------------------------------------------------------------------
# Parameters: PyTorch-like nn.Linear init, then transpose + pad + bf16 pack.
# ---------------------------------------------------------------------------
def _init_linear(key, in_f, out_f, zero_weight=False):
    kw, kb = jax.random.split(key)
    bound = 1.0 / float(in_f) ** 0.5
    if zero_weight:
        w = jnp.zeros((out_f, in_f), jnp.float32)
    else:
        w = jax.random.uniform(kw, (out_f, in_f), jnp.float32, -bound, bound)
    b = jax.random.uniform(kb, (out_f,), jnp.float32, -bound, bound)
    return w, b


def _pack_linear(w, b, in_pad, out_pad):
    """(out,in) f32 -> transposed (in_pad,out_pad) bf16 weight, (1,out_pad) f32 bias."""
    out_f, in_f = w.shape
    wt = jnp.zeros((in_pad, out_pad), jnp.float32).at[:in_f, :out_f].set(w.T)
    bp = jnp.zeros((1, out_pad), jnp.float32).at[0, :out_f].set(b)
    return wt.astype(jnp.bfloat16), bp


def make_mahi_params(key, num_layers, num_hidden, input_dim, input_ch,
                     num_classes, backprop=False):
    din = input_dim * input_dim * input_ch
    h_pad = _round_up(num_hidden, _LANE)
    c_pad = _round_up(num_classes, _LANE)

    key, sub = jax.random.split(key)
    w0, b0 = _init_linear(sub, din, num_hidden)
    w0_p, b0_p = _pack_linear(w0, b0, din, h_pad)      # in-dim left unpadded (matches x)

    ws, bs = [], []
    for _ in range(1, num_layers):
        key, sub = jax.random.split(key)
        w, b = _init_linear(sub, num_hidden, num_hidden)
        wp, bp = _pack_linear(w, b, h_pad, h_pad)
        ws.append(wp)
        bs.append(bp)
    w_stack = jnp.stack(ws) if ws else None            # (L-1, H_pad, H_pad) bf16
    b_stack = jnp.stack(bs) if bs else None            # (L-1, 1, H_pad)     f32

    key, sub = jax.random.split(key)
    # args.backprop == False  =>  layer_out.weight.data.zero_()
    w_o, b_o = _init_linear(sub, num_hidden, num_classes, zero_weight=not backprop)
    wo_p, bo_p = _pack_linear(w_o, b_o, h_pad, c_pad)

    return {"w0": w0_p, "b0": b0_p, "w_stack": w_stack, "b_stack": b_stack,
            "w_out": wo_p, "b_out": bo_p}


# ---------------------------------------------------------------------------
# Forward
# ---------------------------------------------------------------------------
@functools.partial(jax.jit, static_argnames=("num_hidden", "num_classes"))
def mahi_forward(params, x, y, y_onehot, *, num_hidden, num_classes):
    del y_onehot  # cross-entropy is computed from the integer labels directly
    w0, b0 = params["w0"], params["b0"]
    w_stack, b_stack = params["w_stack"], params["b_stack"]
    w_out, b_out = params["w_out"], params["b_out"]
    has_stack = w_stack is not None
    num_layers = 1 + (w_stack.shape[0] if has_stack else 0)

    B = x.shape[0]
    x_flat = x.reshape(B, -1).astype(jnp.bfloat16)     # x.view(B, -1), bf16 for the MXU
    h_pad = w0.shape[1]
    c_pad = w_out.shape[1]
    y2d = y.reshape(B, 1).astype(jnp.int32)

    inputs = [x_flat, w0, b0]
    in_specs = [pl.BlockSpec(x_flat.shape, lambda l: (0, 0)),
                pl.BlockSpec(w0.shape, lambda l: (0, 0)),
                pl.BlockSpec(b0.shape, lambda l: (0, 0))]
    if has_stack:
        inputs += [w_stack, b_stack]
        # Layer l (l >= 1) uses stacked block l-1; the pipeline prefetches the
        # next layer's weight while the current matmul runs.
        in_specs += [
            pl.BlockSpec((1, h_pad, h_pad),
                         lambda l: (jnp.maximum(l - 1, 0), 0, 0)),
            pl.BlockSpec((1, 1, h_pad),
                         lambda l: (jnp.maximum(l - 1, 0), 0, 0)),
        ]
    inputs += [w_out, b_out, y2d]
    in_specs += [pl.BlockSpec(w_out.shape, lambda l: (0, 0)),
                 pl.BlockSpec(b_out.shape, lambda l: (0, 0)),
                 pl.BlockSpec(y2d.shape, lambda l: (0, 0))]

    kernel = _make_fused_kernel(num_layers, B, num_hidden, num_classes, has_stack)

    # Explicit VMEM budget (portable across v5e/v6e/v7x default scoped limits).
    def _nbytes(a):
        return int(a.size) * a.dtype.itemsize
    resident = sum(_nbytes(a) for a in (x_flat, w0, b0, w_out, b_out, y2d))
    streamed = (2 * (h_pad * h_pad * 2 + h_pad * 4)) if has_stack else 0  # double-buffered
    out_bytes = B * c_pad * 4 + _LANE * 4
    scratch_bytes = max(B, 16) * h_pad * 2
    vmem_limit = int(min(max(2 * (resident + streamed + out_bytes + scratch_bytes),
                             8 * 1024 * 1024),
                         64 * 1024 * 1024))

    logits_pad, scalars = pl.pallas_call(
        kernel,
        grid=(num_layers,),
        out_shape=(
            jax.ShapeDtypeStruct((B, c_pad), jnp.float32),
            jax.ShapeDtypeStruct((1, _LANE), jnp.float32),
        ),
        in_specs=in_specs,
        out_specs=(
            pl.BlockSpec((B, c_pad), lambda l: (0, 0)),
            pl.BlockSpec((1, _LANE), lambda l: (0, 0)),
        ),
        scratch_shapes=[
            pltpu.VMEM((B, h_pad), jnp.bfloat16),   # activations carried across layers
            pltpu.SMEM((1,), jnp.float32),          # running local-loss sum
        ],
        compiler_params=pltpu.CompilerParams(
            dimension_semantics=("arbitrary",),
            vmem_limit_bytes=vmem_limit),
    )(*inputs)

    logits = logits_pad[:, :num_classes]
    local_loss = scalars[0, 0]
    true_loss = scalars[0, 1]
    mix_loss = scalars[0, 2]
    return logits, mix_loss, true_loss, local_loss


if __name__ == "__main__":
    # Small shapes consistent with the module's forward.
    B, input_ch, input_dim = 2, 4, 16
    num_layers, num_hidden, num_classes = 3, 32, 10

    key = jax.random.PRNGKey(0)
    kx, ky, kp = jax.random.split(key, 3)
    x = jax.random.normal(kx, (B, input_ch, input_dim, input_dim), jnp.float32)
    y = jax.random.randint(ky, (B,), 0, num_classes)
    y_onehot = jax.nn.one_hot(y, num_classes, dtype=jnp.float32)

    params = make_mahi_params(kp, num_layers, num_hidden, input_dim, input_ch,
                              num_classes, backprop=False)

    logits, mix_loss, true_loss, local_loss = mahi_forward(
        params, x, y, y_onehot, num_hidden=num_hidden, num_classes=num_classes)
    jax.block_until_ready((logits, mix_loss, true_loss, local_loss))

    assert logits.shape == (B, num_classes)
    assert mix_loss.shape == () and true_loss.shape == () and local_loss.shape == ()
    assert bool(jnp.isfinite(true_loss)) and bool(jnp.isfinite(mix_loss))
    assert bool(jnp.isfinite(local_loss))
    print("KERNEL_OK")
</pallas_src>

<mosaic_0001>
module attributes {stable_mosaic.version = 11 : i64} {
  func.func @kernel(%arg0: i32, %arg1: memref<2x1024xbf16, #tpu.memory_space<vmem>>, %arg2: memref<1024x128xbf16, #tpu.memory_space<vmem>>, %arg3: memref<1x128xf32, #tpu.memory_space<vmem>>, %arg4: memref<1x128x128xbf16, #tpu.memory_space<vmem>>, %arg5: memref<1x1x128xf32, #tpu.memory_space<vmem>>, %arg6: memref<128x128xbf16, #tpu.memory_space<vmem>>, %arg7: memref<1x128xf32, #tpu.memory_space<vmem>>, %arg8: memref<2x1xi32, #tpu.memory_space<vmem>>, %arg9: memref<2x128xf32, #tpu.memory_space<vmem>>, %arg10: memref<1x128xf32, #tpu.memory_space<vmem>>, %arg11: memref<2x128xbf16, #tpu.memory_space<vmem>>, %arg12: memref<1xf32, #tpu.memory_space<smem>>) attributes {dimension_semantics = [#tpu.dimension_semantics<arbitrary>], iteration_bounds = array<i64: 3>, scalar_prefetch = 0 : i64, scratch_operands = 2 : i64, tpu.core_type = #tpu.core_type<tc>, window_params = [{pipeline_mode = #tpu.pipeline_mode<synchronous>, transform_indices = @transform_0, window_bounds = array<i64: 2, 1024>}, {pipeline_mode = #tpu.pipeline_mode<synchronous>, transform_indices = @transform_1, window_bounds = array<i64: 1024, 128>}, {pipeline_mode = #tpu.pipeline_mode<synchronous>, transform_indices = @transform_2, window_bounds = array<i64: 1, 128>}, {transform_indices = @transform_3, window_bounds = array<i64: 1, 128, 128>}, {transform_indices = @transform_4, window_bounds = array<i64: 1, 1, 128>}, {pipeline_mode = #tpu.pipeline_mode<synchronous>, transform_indices = @transform_5, window_bounds = array<i64: 128, 128>}, {pipeline_mode = #tpu.pipeline_mode<synchronous>, transform_indices = @transform_6, window_bounds = array<i64: 1, 128>}, {pipeline_mode = #tpu.pipeline_mode<synchronous>, transform_indices = @transform_7, window_bounds = array<i64: 2, 1>}, {pipeline_mode = #tpu.pipeline_mode<synchronous>, transform_indices = @transform_8, window_bounds = array<i64: 2, 128>}, {pipeline_mode = #tpu.pipeline_mode<synchronous>, transform_indices = @transform_9, window_bounds = array<i64: 1, 128>}]} {
    %c0_i32 = arith.constant 0 : i32
    %0 = arith.cmpi eq, %arg0, %c0_i32 : i32
    %1 = arith.extui %0 : i1 to i32
    %c0_i32_0 = arith.constant 0 : i32
    %2 = arith.cmpi ne, %1, %c0_i32_0 : i32
    scf.if %2 {
      %c0 = arith.constant 0 : index
      %c0_4 = arith.constant 0 : index
      %9 = vector.load %arg1[%c0, %c0_4] : memref<2x1024xbf16, #tpu.memory_space<vmem>>, vector<2x1024xbf16>
      %c0_5 = arith.constant 0 : index
      %c0_6 = arith.constant 0 : index
      %10 = vector.load %arg2[%c0_5, %c0_6] : memref<1024x128xbf16, #tpu.memory_space<vmem>>, vector<1024x128xbf16>
      %cst = arith.constant dense<0.000000e+00> : vector<2x128xf32>
      %11 = tpu.matmul %9, %10, %cst {dimension_numbers = #tpu.dot_dimension_numbers<[1], [0], [0], [1], [0, 0, 1, 1], [], []>} : vector<2x1024xbf16>, vector<1024x128xbf16>, vector<2x128xf32> -> vector<2x128xf32>
      %c0_7 = arith.constant 0 : index
      %c0_8 = arith.constant 0 : index
      %12 = vector.load %arg3[%c0_7, %c0_8] : memref<1x128xf32, #tpu.memory_space<vmem>>, vector<1x128xf32>
      %13 = vector.broadcast %12 : vector<1x128xf32> to vector<2x128xf32>
      %14 = arith.addf %11, %13 : vector<2x128xf32>
      %cst_9 = arith.constant 0.000000e+00 : f32
      %15 = vector.broadcast %cst_9 : f32 to vector<2x128xf32>
      %16 = arith.maximumf %14, %15 : vector<2x128xf32>
      %17 = arith.mulf %16, %16 : vector<2x128xf32>
      %18 = vector.shape_cast %17 : vector<2x128xf32> to vector<1x2x128xf32>
      %cst_10 = arith.constant dense<0.000000e+00> : vector<1xf32>
      %19 = vector.multi_reduction <add>, %18, %cst_10 [1, 2] : vector<1x2x128xf32> to vector<1xf32>
      %20 = vector.shape_cast %19 : vector<1xf32> to vector<1x1x1xf32>
      %21 = vector.extract %20[0, 0, 0] : f32 from vector<1x1x1xf32>
      %cst_11 = arith.constant 1.562500e-02 : f32
      %22 = arith.mulf %21, %cst_11 : f32
      %c0_12 = arith.constant 0 : index
      %23 = memref.load %arg12[%c0_12] : memref<1xf32, #tpu.memory_space<smem>>
      memref.store %22, %arg12[%c0_12] : memref<1xf32, #tpu.memory_space<smem>>
      %24 = arith.truncf %16 : vector<2x128xf32> to vector<2x128xbf16>
      %c0_13 = arith.constant 0 : index
      %c0_14 = arith.constant 0 : index
      %25 = vector.load %arg11[%c0_13, %c0_14] : memref<2x128xbf16, #tpu.memory_space<vmem>>, vector<2x128xbf16>
      tpu.vector_store %arg11[%c0_13, %c0_14], %24 {strides = array<i32>} : memref<2x128xbf16, #tpu.memory_space<vmem>>, vector<2x128xbf16>,
    } else {
    }
    %c0_i32_1 = arith.constant 0 : i32
    %3 = arith.cmpi sgt, %arg0, %c0_i32_1 : i32
    %4 = arith.extui %3 : i1 to i32
    %c0_i32_2 = arith.constant 0 : i32
    %5 = arith.cmpi ne, %4, %c0_i32_2 : i32
    scf.if %5 {
      %c0 = arith.constant 0 : index
      %c0_4 = arith.constant 0 : index
      %9 = vector.load %arg11[%c0, %c0_4] : memref<2x128xbf16, #tpu.memory_space<vmem>>, vector<2x128xbf16>
      %c0_5 = arith.constant 0 : index
      %c0_6 = arith.constant 0 : index
      %c0_7 = arith.constant 0 : index
      %10 = vector.load %arg4[%c0_5, %c0_6, %c0_7] : memref<1x128x128xbf16, #tpu.memory_space<vmem>>, vector<1x128x128xbf16>
      %11 = vector.shape_cast %10 : vector<1x128x128xbf16> to vector<128x128xbf16>
      %cst = arith.constant dense<0.000000e+00> : vector<2x128xf32>
      %12 = tpu.matmul %9, %11, %cst {dimension_numbers = #tpu.dot_dimension_numbers<[1], [0], [0], [1], [0, 0, 1, 1], [], []>} : vector<2x128xbf16>, vector<128x128xbf16>, vector<2x128xf32> -> vector<2x128xf32>
      %c0_8 = arith.constant 0 : index
      %c0_9 = arith.constant 0 : index
      %c0_10 = arith.constant 0 : index
      %13 = vector.load %arg5[%c0_8, %c0_9, %c0_10] : memref<1x1x128xf32, #tpu.memory_space<vmem>>, vector<1x1x128xf32>
      %14 = vector.shape_cast %13 : vector<1x1x128xf32> to vector<1x128xf32>
      %15 = vector.broadcast %14 : vector<1x128xf32> to vector<2x128xf32>
      %16 = arith.addf %12, %15 : vector<2x128xf32>
      %cst_11 = arith.constant 0.000000e+00 : f32
      %17 = vector.broadcast %cst_11 : f32 to vector<2x128xf32>
      %18 = arith.maximumf %16, %17 : vector<2x128xf32>
      %c0_12 = arith.constant 0 : index
      %19 = memref.load %arg12[%c0_12] : memref<1xf32, #tpu.memory_space<smem>>
      %20 = arith.mulf %18, %18 : vector<2x128xf32>
      %21 = vector.shape_cast %20 : vector<2x128xf32> to vector<1x2x128xf32>
      %cst_13 = arith.constant dense<0.000000e+00> : vector<1xf32>
      %22 = vector.multi_reduction <add>, %21, %cst_13 [1, 2] : vector<1x2x128xf32> to vector<1xf32>
      %23 = vector.shape_cast %22 : vector<1xf32> to vector<1x1x1xf32>
      %24 = vector.extract %23[0, 0, 0] : f32 from vector<1x1x1xf32>
      %cst_14 = arith.constant 1.562500e-02 : f32
      %25 = arith.mulf %24, %cst_14 : f32
      %26 = arith.addf %19, %25 : f32
      %c0_15 = arith.constant 0 : index
      %27 = memref.load %arg12[%c0_15] : memref<1xf32, #tpu.memory_space<smem>>
      memref.store %26, %arg12[%c0_15] : memref<1xf32, #tpu.memory_space<smem>>
      %28 = arith.truncf %18 : vector<2x128xf32> to vector<2x128xbf16>
      %c0_16 = arith.constant 0 : index
      %c0_17 = arith.constant 0 : index
      %29 = vector.load %arg11[%c0_16, %c0_17] : memref<2x128xbf16, #tpu.memory_space<vmem>>, vector<2x128xbf16>
      tpu.vector_store %arg11[%c0_16, %c0_17], %28 {strides = array<i32>} : memref<2x128xbf16, #tpu.memory_space<vmem>>, vector<2x128xbf16>,
    } else {
    }
    %c2_i32 = arith.constant 2 : i32
    %6 = arith.cmpi eq, %arg0, %c2_i32 : i32
    %7 = arith.extui %6 : i1 to i32
    %c0_i32_3 = arith.constant 0 : i32
    %8 = arith.cmpi ne, %7, %c0_i32_3 : i32
    scf.if %8 {
      %c0 = arith.constant 0 : index
      %c0_4 = arith.constant 0 : index
      %9 = vector.load %arg11[%c0, %c0_4] : memref<2x128xbf16, #tpu.memory_space<vmem>>, vector<2x128xbf16>
      %c0_5 = arith.constant 0 : index
      %c0_6 = arith.constant 0 : index
      %10 = vector.load %arg6[%c0_5, %c0_6] : memref<128x128xbf16, #tpu.memory_space<vmem>>, vector<128x128xbf16>
      %cst = arith.constant dense<0.000000e+00> : vector<2x128xf32>
      %11 = tpu.matmul %9, %10, %cst {dimension_numbers = #tpu.dot_dimension_numbers<[1], [0], [0], [1], [0, 0, 1, 1], [], []>} : vector<2x128xbf16>, vector<128x128xbf16>, vector<2x128xf32> -> vector<2x128xf32>
      %c0_7 = arith.constant 0 : index
      %c0_8 = arith.constant 0 : index
      %12 = vector.load %arg7[%c0_7, %c0_8] : memref<1x128xf32, #tpu.memory_space<vmem>>, vector<1x128xf32>
      %13 = vector.broadcast %12 : vector<1x128xf32> to vector<2x128xf32>
      %14 = arith.addf %11, %13 : vector<2x128xf32>
      %c0_9 = arith.constant 0 : index
      %c0_10 = arith.constant 0 : index
      %15 = vector.load %arg9[%c0_9, %c0_10] : memref<2x128xf32, #tpu.memory_space<vmem>>, vector<2x128xf32>
      tpu.vector_store %arg9[%c0_9, %c0_10], %14 {strides = array<i32>} : memref<2x128xf32, #tpu.memory_space<vmem>>, vector<2x128xf32>,
      %16 = tpu.iota {dimensions = array<i32: 1>} : vector<1x128xi32>
      %c10_i32 = arith.constant 10 : i32
      %17 = vector.broadcast %c10_i32 : i32 to vector<1x128xi32>
      %18 = arith.cmpi slt, %16, %17 : vector<1x128xi32>
      %cst_11 = arith.constant -1.000000e+30 : f32
      %19 = vector.shape_cast %18 : vector<1x128xi1> to vector<1x128xi1>
      %20 = vector.broadcast %19 : vector<1x128xi1> to vector<2x128xi1>
      %21 = vector.broadcast %cst_11 : f32 to vector<2x128xf32>
      %22 = arith.select %20, %14, %21 : vector<2x128xi1>, vector<2x128xf32>
      %cst_12 = arith.constant dense<0xFF800000> : vector<2xf32>
      %23 = vector.multi_reduction <maximumf>, %22, %cst_12 [1] : vector<2x128xf32> to vector<2xf32>
      %24 = vector.shape_cast %23 : vector<2xf32> to vector<2x1xf32>
      %25 = vector.broadcast %24 : vector<2x1xf32> to vector<2x128xf32>
      %26 = arith.subf %22, %25 : vector<2x128xf32>
      %27 = math.exp %26 : vector<2x128xf32>
      %cst_13 = arith.constant dense<0.000000e+00> : vector<2xf32>
      %28 = vector.multi_reduction <add>, %27, %cst_13 [1] : vector<2x128xf32> to vector<2xf32>
      %29 = vector.shape_cast %28 : vector<2xf32> to vector<2x1xf32>
      %30 = math.log %29 : vector<2x1xf32>
      %31 = arith.addf %24, %30 : vector<2x1xf32>
      %c0_14 = arith.constant 0 : index
      %c0_15 = arith.constant 0 : index
      %32 = vector.load %arg8[%c0_14, %c0_15] : memref<2x1xi32, #tpu.memory_space<vmem>>, vector<2x1xi32>
      %33 = vector.broadcast %16 : vector<1x128xi32> to vector<2x128xi32>
      %34 = vector.broadcast %32 : vector<2x1xi32> to vector<2x128xi32>
      %35 = arith.cmpi eq, %33, %34 : vector<2x128xi32>
      %36 = arith.extui %35 : vector<2x128xi1> to vector<2x128xi32>
      %37 = arith.sitofp %36 : vector<2x128xi32> to vector<2x128xf32>
      %38 = arith.mulf %14, %37 : vector<2x128xf32>
      %cst_16 = arith.constant dense<0.000000e+00> : vector<2xf32>
      %39 = vector.multi_reduction <add>, %38, %cst_16 [1] : vector<2x128xf32> to vector<2xf32>
      %40 = vector.shape_cast %39 : vector<2xf32> to vector<2x1xf32>
      %41 = arith.subf %31, %40 : vector<2x1xf32>
      %42 = vector.shape_cast %41 : vector<2x1xf32> to vector<1x2x1xf32>
      %cst_17 = arith.constant dense<0.000000e+00> : vector<1xf32>
      %43 = vector.multi_reduction <add>, %42, %cst_17 [1, 2] : vector<1x2x1xf32> to vector<1xf32>
      %44 = vector.shape_cast %43 : vector<1xf32> to vector<1x1x1xf32>
      %45 = vector.extract %44[0, 0, 0] : f32 from vector<1x1x1xf32>
      %cst_18 = arith.constant 2.000000e+00 : f32
      %46 = arith.divf %45, %cst_18 : f32
      %c0_19 = arith.constant 0 : index
      %47 = memref.load %arg12[%c0_19] : memref<1xf32, #tpu.memory_space<smem>>
      %48 = arith.subf %47, %46 : f32
      %49 = arith.mulf %48, %48 : f32
      %50 = tpu.iota {dimensions = array<i32: 1>} : vector<1x128xi32>
      %c0_i32_20 = arith.constant 0 : i32
      %51 = vector.broadcast %c0_i32_20 : i32 to vector<1x128xi32>
      %52 = arith.cmpi eq, %50, %51 : vector<1x128xi32>
      %cst_21 = arith.constant 0.000000e+00 : f32
      %53 = vector.broadcast %47 : f32 to vector<1x128xf32>
      %54 = vector.broadcast %cst_21 : f32 to vector<1x128xf32>
      %55 = arith.select %52, %53, %54 : vector<1x128xi1>, vector<1x128xf32>
      %c1_i32 = arith.constant 1 : i32
      %56 = vector.broadcast %c1_i32 : i32 to vector<1x128xi32>
      %57 = arith.cmpi eq, %50, %56 : vector<1x128xi32>
      %cst_22 = arith.constant 0.000000e+00 : f32
      %58 = vector.broadcast %46 : f32 to vector<1x128xf32>
      %59 = vector.broadcast %cst_22 : f32 to vector<1x128xf32>
      %60 = arith.select %57, %58, %59 : vector<1x128xi1>, vector<1x128xf32>
      %61 = arith.addf %55, %60 : vector<1x128xf32>
      %c2_i32_23 = arith.constant 2 : i32
      %62 = vector.broadcast %c2_i32_23 : i32 to vector<1x128xi32>
      %63 = arith.cmpi eq, %50, %62 : vector<1x128xi32>
      %cst_24 = arith.constant 0.000000e+00 : f32
      %64 = vector.broadcast %49 : f32 to vector<1x128xf32>
      %65 = vector.broadcast %cst_24 : f32 to vector<1x128xf32>
      %66 = arith.select %63, %64, %65 : vector<1x128xi1>, vector<1x128xf32>
      %67 = arith.addf %61, %66 : vector<1x128xf32>
      %c0_25 = arith.constant 0 : index
      %c0_26 = arith.constant 0 : index
      %68 = vector.load %arg10[%c0_25, %c0_26] : memref<1x128xf32, #tpu.memory_space<vmem>>, vector<1x128xf32>
      tpu.vector_store %arg10[%c0_25, %c0_26], %67 {strides = array<i32>} : memref<1x128xf32, #tpu.memory_space<vmem>>, vector<1x128xf32>,
    } else {
    }
    return
  }
  func.func @transform_0(%arg0: i32) -> (i32, i32) {
    %c0_i32 = arith.constant 0 : i32
    %c0_i32_0 = arith.constant 0 : i32
    %c0_i32_1 = arith.constant 0 : i32
    return %c0_i32, %c0_i32_0 : i32, i32
  }
  func.func @transform_1(%arg0: i32) -> (i32, i32) {
    %c0_i32 = arith.constant 0 : i32
    %c0_i32_0 = arith.constant 0 : i32
    %c0_i32_1 = arith.constant 0 : i32
    return %c0_i32, %c0_i32_0 : i32, i32
  }
  func.func @transform_2(%arg0: i32) -> (i32, i32) {
    %c0_i32 = arith.constant 0 : i32
    %c0_i32_0 = arith.constant 0 : i32
    %c0_i32_1 = arith.constant 0 : i32
    return %c0_i32, %c0_i32_0 : i32, i32
  }
  func.func @transform_3(%arg0: i32) -> (i32, i32, i32) {
    %c1_i32 = arith.constant 1 : i32
    %0 = arith.subi %arg0, %c1_i32 : i32
    %c0_i32 = arith.constant 0 : i32
    %1 = arith.maxsi %0, %c0_i32 : i32
    %c0_i32_0 = arith.constant 0 : i32
    %c0_i32_1 = arith.constant 0 : i32
    %c0_i32_2 = arith.constant 0 : i32
    return %1, %c0_i32_0, %c0_i32_1 : i32, i32, i32
  }
  func.func @transform_4(%arg0: i32) -> (i32, i32, i32) {
    %c1_i32 = arith.constant 1 : i32
    %0 = arith.subi %arg0, %c1_i32 : i32
    %c0_i32 = arith.constant 0 : i32
    %1 = arith.maxsi %0, %c0_i32 : i32
    %c0_i32_0 = arith.constant 0 : i32
    %c0_i32_1 = arith.constant 0 : i32
    %c0_i32_2 = arith.constant 0 : i32
    return %1, %c0_i32_0, %c0_i32_1 : i32, i32, i32
  }
  func.func @transform_5(%arg0: i32) -> (i32, i32) {
    %c0_i32 = arith.constant 0 : i32
    %c0_i32_0 = arith.constant 0 : i32
    %c0_i32_1 = arith.constant 0 : i32
    return %c0_i32, %c0_i32_0 : i32, i32
  }
  func.func @transform_6(%arg0: i32) -> (i32, i32) {
    %c0_i32 = arith.constant 0 : i32
    %c0_i32_0 = arith.constant 0 : i32
    %c0_i32_1 = arith.constant 0 : i32
    return %c0_i32, %c0_i32_0 : i32, i32
  }
  func.func @transform_7(%arg0: i32) -> (i32, i32) {
    %c0_i32 = arith.constant 0 : i32
    %c0_i32_0 = arith.constant 0 : i32
    %c0_i32_1 = arith.constant 0 : i32
    return %c0_i32, %c0_i32_0 : i32, i32
  }
  func.func @transform_8(%arg0: i32) -> (i32, i32) {
    %c0_i32 = arith.constant 0 : i32
    %c0_i32_0 = arith.constant 0 : i32
    %c0_i32_1 = arith.constant 0 : i32
    return %c0_i32, %c0_i32_0 : i32, i32
  }
  func.func @transform_9(%arg0: i32) -> (i32, i32) {
    %c0_i32 = arith.constant 0 : i32
    %c0_i32_0 = arith.constant 0 : i32
    %c0_i32_1 = arith.constant 0 : i32
    return %c0_i32, %c0_i32_0 : i32, i32
  }
}

</mosaic_0001>

<bundles_post_ra>
// kernel: mahi_forward.1
= control target key start
LH: loop header
LB: loop body
LE: loop exit
PB: predicated region body
PF: predicated region fallthrough
CT: control target
= control target key end

     0   :  { %15 = vsyncpa [#allocation5], 0  ;;  %s2182_s0 = inlined_call_operand.vmem [shape: bf16[2,1024], index: 0, kind: input, shape index: {}]   ;;  %s2183_s1 = inlined_call_operand.hbm [shape: bf16[1024,128], index: 1, kind: input, shape index: {}]   ;;  %s2184_s2 = inlined_call_operand.vmem [shape: f32[1,128], index: 2, kind: input, shape index: {}]   ;;  %s2185_s3 = inlined_call_operand.vmem [shape: bf16[2,128,128], index: 3, kind: input, shape index: {}]   ;;  %s2186_s4 = inlined_call_operand.vmem [shape: f32[2,1,128], index: 4, kind: input, shape index: {}]   ;;  %s2187_s5 = inlined_call_operand.vmem [shape: bf16[128,128], index: 5, kind: input, shape index: {}]   ;;  %s2188_s6 = inlined_call_operand.vmem [shape: f32[1,128], index: 6, kind: input, shape index: {}]   ;;  %s2189_s7 = inlined_call_operand.vmem [shape: s32[2,1], index: 7, kind: input, shape index: {}]   ;;  %s2190_s8 = inlined_call_operand.hbm [shape: f32[2,128], index: 8, kind: output, shape index: {0}]   ;;  %s2191_s9 = inlined_call_operand.vmem [shape: f32[1,128], index: 9, kind: output, shape index: {1}]  }
   0x1   :  { %16 = vsyncpa [#allocation6], 0  ;;  %s2053_s30 = smov 0  }
   0x2 LB: > { %s2059_s10 = sadd.s32 4294967295, %s1991_s30   ;;  %p1540_p0 = scmp.ge.s32.totalorder %s1991_s30, 1  ;;  %s1991_s30 = sphi %s2053_s30, %s22_s30  }
   0x3   : > { %p259_p1 = scmp.lt.s32.totalorder %s1991_s30, 4  ;;  %s1993_s11 = smov [#allocation4]  }
   0x4   : > { %s274_s12 = sshll.u32 %s1993_s11, 4  ;;  %p1819_p4 = scmp.eq.s32.totalorder %s2059_s10, 0  ;;  %s275_s12 = int_to_ptr.vmem [resolvable:$true] %s274_s12 }
   0x5   : > { %p2064_p3 = pnand %p1540_p0, %p259_p1  ;;  %s1938_s14 = scalar_lea.vmem %s275_s12, 8192 }
   0x6   : > { %p1939_p8 = scmp.ne.s32.totalorder %s275_s12, %s1938_s14  ;;  %p1946_p11 = scmp.lt.s32.totalorder %s275_s12, %s275_s12 }
   0x7   : > { %p1815_p5 = pneg %p2064_p3  ;;  %p1947_p12 = scmp.lt.s32.totalorder %s1938_s14, %s1938_s14 }
   0x9   : > { %p1816_p6 = pnand %p1819_p4, %p1815_p5  ;;  %p1948_p13 = por %p1947_p12, %p1946_p11 }
   0xb   : > { %p1929_p7 = pneg %p1816_p6 }
   0xd   : > { %p1941_p9 = pnand %p1939_p8, %p1929_p7 }
   0xf   : > { %p1942_p10 = pneg %p1941_p9 }
  0x11   : > { %p1949_p2 = pnand %p1948_p13, %p1942_p10 }
  0x13   : > { %1952 = shalt.err (!%p1949_p2)
}
  0x14   : > { %s1994_s15 = smov 64   ;;  %s1995_s16 = smov 4  }
  0x15   : > { %1818 = dma.hbm_to_vmem [thread:$0]  (!%p1816_p6), %s2183_s1, 8192, %s275_s12, [#allocation5], %s1994_s15, %s1994_s15, %s1995_s16  }
  0x16   : > { %328 = sbr.rel (%p2064_p3) target bundleno = 1734 (0x6c6), region = 52 }
  0x1b   : > { %1982 = dma.done.wait (%p1819_p4), [#allocation5], 8192  }
  0x1c   : > { %1984 = vsyncadd (%p1819_p4), [#allocation5], 4294959104  ;;  %s1545_s19 = sadd.s32 4294967295, %s2059_s10  ;;  %p2193_p2 = scmp.ne.s32.totalorder %s2059_s10, 0 }
  0x1d   : > { %p369_p0 = scmp.gt.s32.totalorder %s1545_s19, 0  ;;  %p1546_p1 = scmp.lt.s32.totalorder %s1545_s19, 1 }
  0x1e   : > { %392 = sbr.rel (%p2193_p2) target bundleno = 510 (0x1fe), region = 60 }
  0x1f   : > { %s2195_s19 = smov (!%p369_p0, %s1545_s19), 0 }
  0x20   : > { %s2197_s19 = smov (!%p1546_p1, %s2195_s19), 1 }
  0x21   : > { %s1652_s20 = sshll.u32 %s2197_s19, 6  ;;  %s384_s23 = scalar_lea.vmem %s2186_s4, %s2197_s19 }
  0x22   : > { %s2093_s26 = scalar_lea.vmem %s2185_s3, %s1652_s20 }
  0x23   : > { %v1841_v0 = vld [vmem:[#allocation4 + $0x78] sm:$0xff]   ;;  %v1845_v4 = vld [vmem:[#allocation4 + $0x70] sm:$0xff]   ;;  %v1849_v8 = vld [vmem:[#allocation4 + $0x68] sm:$0xff]   ;;  %v534_v28 = vlaneseq  ;;  %v1996_v36 = vmov 1966171168   ;;  %vm1133_vm0 = vcmask 1041408  }
  0x24   : > { %v1842_v1 = vld [vmem:[#allocation4 + $0xf8] sm:$0xff]   ;;  %1655 = vmatprep.subr.bf16.mxu0 %v1841_v0  ;;  %v1846_v5 = vld [vmem:[#allocation4 + $0xf0] sm:$0xff]   ;;  %v1850_v9 = vld [vmem:[#allocation4 + $0xe8] sm:$0xff]   ;;  %v532_v37 = vunpack.c.l.s4 %v1996_v36 }
  0x25   : > { %v1843_v2 = vld [vmem:[#allocation4 + $0x38] sm:$0xff]   ;;  %1677 = vmatprep.subr.bf16.mxu1 %v1842_v1  ;;  %v1847_v6 = vld [vmem:[#allocation4 + $0x30] sm:$0xff]   ;;  %v1851_v10 = vld [vmem:[#allocation4 + $0x28] sm:$0xff]   ;;  %v535_v33 = vshrl.u32 %v534_v28, 7 }
  0x26   : > { %v1844_v3 = vld [vmem:[#allocation4 + $0xb8] sm:$0xff]   ;;  %1656 = vmatpush3.bf16.msra.mxu0 %v1843_v2  ;;  %v1848_v7 = vld [vmem:[#allocation4 + $0xb0] sm:$0xff]   ;;  %v1852_v11 = vld [vmem:[#allocation4 + $0xa8] sm:$0xff]   ;;  %v533_v40 = vunpack.c.0.s8 %v532_v37 }
  0x27   : > { %1678 = vmatpush3.bf16.msra.mxu1 %v1844_v3  ;;  %1657 = vmatprep.subr.bf16.mxu0 %v1845_v4  ;;  %v1853_v12 = vld [vmem:[#allocation4 + $0x60] sm:$0xff]   ;;  %v1857_v16 = vld [vmem:[#allocation4 + $0x58] sm:$0xff]   ;;  %v1861_v20 = vld [vmem:[#allocation4 + $0x50] sm:$0xff]  }
  0x28   : > { %1679 = vmatprep.subr.bf16.mxu1 %v1846_v5  ;;  %v1854_v13 = vld [vmem:[#allocation4 + $0xe0] sm:$0xff]   ;;  %v1858_v17 = vld [vmem:[#allocation4 + $0xd8] sm:$0xff]   ;;  %v1862_v21 = vld [vmem:[#allocation4 + $0xd0] sm:$0xff]   ;;  %v2100_v41 = vsub.s32 %v533_v40, %v535_v33 }
  0x29   : > { %v1855_v14 = vld [vmem:[#allocation4 + $0x20] sm:$0xff]   ;;  %v1859_v18 = vld [vmem:[#allocation4 + $0x18] sm:$0xff]   ;;  %v1863_v22 = vld [vmem:[#allocation4 + $0x10] sm:$0xff]  }
  0x2a   : > { %1658 = vmatpush3.bf16.msra.mxu0 %v1847_v6  ;;  %v1856_v15 = vld [vmem:[#allocation4 + $0xa0] sm:$0xff]   ;;  %v1860_v19 = vld [vmem:[#allocation4 + $0x98] sm:$0xff]   ;;  %v1864_v23 = vld [vmem:[#allocation4 + $0x90] sm:$0xff]  }
  0x2b   : > { %1680 = vmatpush3.bf16.msra.mxu1 %v1848_v7  ;;  %1659 = vmatprep.subr.bf16.mxu0 %v1849_v8  ;;  %v1865_v24 = vld [vmem:[#allocation4 + $0x48] sm:$0xff]   ;;  %v1869_v29 = vld [vmem:[#allocation4 + $0x40] sm:$0xff]   ;;  %v1874_v35 = vld [vmem:[#allocation4 + $0x178] sm:$0xff]  }
  0x2c   : > { %1681 = vmatprep.subr.bf16.mxu1 %v1850_v9  ;;  %v1866_v25 = vld [vmem:[#allocation4 + $0xc8] sm:$0xff]   ;;  %v1870_v30 = vld [vmem:[#allocation4 + $0xc0] sm:$0xff]   ;;  %v1875_v38 = vld [vmem:[#allocation4 + $0x1f8] sm:$0xff]  }
  0x2d   : > { %v1867_v26 = vld [vmem:[#allocation4 + $0x8] sm:$0xff]   ;;  %v1871_v31 = vld [vmem:[#allocation4] sm:$0xff]   ;;  %v1876_v48 = vld [vmem:[#allocation4 + $0x138] sm:$0xff]  }
  0x2e   : > { %1660 = vmatpush3.bf16.msra.mxu0 %v1851_v10  ;;  %v1868_v27 = vld [vmem:[#allocation4 + $0x88] sm:$0xff]   ;;  %v1872_v32 = vld [vmem:[#allocation4 + $0x80] sm:$0xff]   ;;  %v1878_v51 = vld [vmem:[#allocation4 + $0x170] sm:$0xff]  }
  0x2f   : > { %1682 = vmatpush3.bf16.msra.mxu1 %v1852_v11  ;;  %1661 = vmatprep.subr.bf16.mxu0 %v1853_v12  ;;  %v393_v34 = vld [vmem:[%s2182_s0] sm:$0xff]  ;;  %v1879_v54 = vld [vmem:[#allocation4 + $0x1f0] sm:$0xff]   ;;  %v1882_v57 = vld [vmem:[#allocation4 + $0x168] sm:$0xff]  }
  0x30   : > { %1683 = vmatprep.subr.bf16.mxu1 %v1854_v13  ;;  %v530_v39 = vcombine.high %v393_v34, %v393_v34  ;;  %v537_v42 = vrot.slane %v393_v34, %v2100_v41  ;;  %v1877_v53 = vld [vmem:[#allocation4 + $0x1b8] sm:$0xff]   ;;  %v1880_v56 = vld [vmem:[#allocation4 + $0x130] sm:$0xff]   ;;  %v1883_v59 = vld [vmem:[#allocation4 + $0x1e8] sm:$0xff]  }
  0x31   : > { %v1881_v58 = vld [vmem:[#allocation4 + $0x1b0] sm:$0xff]   ;;  %v1884_v60 = vld [vmem:[#allocation4 + $0x128] sm:$0xff]   ;;  %v1886_v61 = vld [vmem:[#allocation4 + $0x160] sm:$0xff]  }
  0x32   : > { %1662 = vmatpush3.bf16.msra.mxu0 %v1855_v14  ;;  %v2104_v43 = vrot.slane %v530_v39, %v2100_v41  ;;  %v545_v44 = vcombine.high %v537_v42, %v537_v42  ;;  %v553_v45 = vrot.slane %v537_v42, %v2100_v41  ;;  %v1885_v62 = vld [vmem:[#allocation4 + $0x1a8] sm:$0xff]   ;;  %v1887_v63 = vld [vmem:[#allocation4 + $0x1e0] sm:$0xff]   ;;  %v1890_v1 = vld [vmem:[#allocation4 + $0x158] sm:$0xff]  }
  0x33   : > { %1684 = vmatpush3.bf16.msra.mxu1 %v1856_v15  ;;  %1663 = vmatprep.subr.bf16.mxu0 %v1857_v16  ;;  %v1888_v0 = vld [vmem:[#allocation4 + $0x120] sm:$0xff]   ;;  %v1891_v3 = vld [vmem:[#allocation4 + $0x1d8] sm:$0xff]   ;;  %v1894_v5 = vld [vmem:[#allocation4 + $0x150] sm:$0xff]  }
  0x34   : > { %1685 = vmatprep.subr.bf16.mxu1 %v1858_v17  ;;  %v546_v46 = vcombine.high %v2104_v43, %v2104_v43  ;;  %v567_v47 = vrot.slane %v545_v44, %v2100_v41  ;;  %v575_v50 = vcombine.high %v553_v45, %v553_v45  ;;  %v1889_v2 = vld [vmem:[#allocation4 + $0x1a0] sm:$0xff]   ;;  %v1892_v4 = vld [vmem:[#allocation4 + $0x118] sm:$0xff]   ;;  %v1895_v7 = vld [vmem:[#allocation4 + $0x1d0] sm:$0xff]   ;;  %v560_v17 = vrot.slane %v2104_v43, %v2100_v41 }
  0x35   : > { %v1893_v6 = vld [vmem:[#allocation4 + $0x198] sm:$0xff]   ;;  %v1896_v8 = vld [vmem:[#allocation4 + $0x110] sm:$0xff]   ;;  %v1898_v9 = vld [vmem:[#allocation4 + $0x148] sm:$0xff]  }
  0x36   : > { %1664 = vmatpush3.bf16.msra.mxu0 %v1859_v18  ;;  %v574_v49 = vrot.slane %v546_v46, %v2100_v41  ;;  %1003 = vmatprep.mubr.bf16.mxu0 %v567_v47  ;;  %v577_v52 = vcombine.high %v567_v47, %v567_v47  ;;  %v1897_v10 = vld [vmem:[#allocation4 + $0x190] sm:$0xff]   ;;  %v1899_v11 = vld [vmem:[#allocation4 + $0x1c8] sm:$0xff]   ;;  %v1902_v13 = vld [vmem:[#allocation4 + $0x140] sm:$0xff]  }
  0x37   : > { %1686 = vmatpush3.bf16.msra.mxu1 %v1860_v19  ;;  %1665 = vmatprep.subr.bf16.mxu0 %v1861_v20  ;;  %v1900_v12 = vld [vmem:[#allocation4 + $0x108] sm:$0xff]   ;;  %v1903_v15 = vld [vmem:[#allocation4 + $0x1c0] sm:$0xff]   ;;  %v576_v19 = vcombine.high %v560_v17, %v560_v17 }
  0x38   : > { %1687 = vmatprep.subr.bf16.mxu1 %v1862_v21  ;;  %v578_v55 = vcombine.high %v574_v49, %v574_v49  ;;  %1043 = vmatprep.mubr.bf16.mxu1 %v577_v52  ;;  %v1901_v14 = vld [vmem:[#allocation4 + $0x188] sm:$0xff]   ;;  %v1904_v16 = vld [vmem:[#allocation4 + $0x100] sm:$0xff]  }
  0x39   : > { %v1905_v18 = vld [vmem:[#allocation4 + $0x180] sm:$0xff]  }
  0x3a   : > { %1666 = vmatpush3.bf16.msra.mxu0 %v1863_v22 }
  0x3b   : > { %1688 = vmatpush3.bf16.msra.mxu1 %v1864_v23  ;;  %1667 = vmatprep.subr.bf16.mxu0 %v1865_v24 }
  0x3c   : > { %1689 = vmatprep.subr.bf16.mxu1 %v1866_v25 }
  0x3e   : > { %1668 = vmatpush3.bf16.msra.mxu0 %v1867_v26 }
  0x3f   : > { %1690 = vmatpush3.bf16.msra.mxu1 %v1868_v27  ;;  %1669 = vmatprep.subr.bf16.mxu0 %v1869_v29  ;;  %v1560_v29 = vld [vmem:[%s2184_s2] ss:$0 sm:$0xff] }
  0x40   : > { %1691 = vmatprep.subr.bf16.mxu1 %v1870_v30 }
  0x42   : > { %1670 = vmatpush3.bf16.msra.mxu0 %v1871_v31 }
  0x43   : > { %1692 = vmatpush3.bf16.msra.mxu1 %v1872_v32  ;;  %1699 = vmatprep.subr.bf16.mxu0 %v1874_v35 }
  0x44   : > { %1721 = vmatprep.subr.bf16.mxu1 %v1875_v38 }
  0x45   : > { %1004 = vmatmul.mubr.bf16.vlgmr.msra.gmra.mxu0 %v553_v45 }
  0x46   : > { %1700 = vmatpush3.bf16.msra.mxu0 %v1876_v48  ;;  %1044 = vmatmul.mubr.bf16.vlgmr.msra.gmra.mxu1 %v575_v50 }
  0x47   : > { %1701 = vmatprep.subr.bf16.mxu0 %v1878_v51  ;;  %1722 = vmatpush3.bf16.msra.mxu1 %v1877_v53 }
  0x48   : > { %1083 = vmatprep.mubr.bf16.mxu0 %v574_v49  ;;  %1723 = vmatprep.subr.bf16.mxu1 %v1879_v54 }
  0x49   : > { %1123 = vmatprep.mubr.bf16.mxu1 %v578_v55 }
  0x4a   : > { %1702 = vmatpush3.bf16.msra.mxu0 %v1880_v56 }
  0x4b   : > { %1703 = vmatprep.subr.bf16.mxu0 %v1882_v57  ;;  %1724 = vmatpush3.bf16.msra.mxu1 %v1881_v58 }
  0x4c   : > { %1725 = vmatprep.subr.bf16.mxu1 %v1883_v59 }
  0x4e   : > { %1704 = vmatpush3.bf16.msra.mxu0 %v1884_v60 }
  0x4f   : > { %1705 = vmatprep.subr.bf16.mxu0 %v1886_v61  ;;  %1726 = vmatpush3.bf16.msra.mxu1 %v1885_v62 }
  0x50   : > { %1727 = vmatprep.subr.bf16.mxu1 %v1887_v63 }
  0x52   : > { %1706 = vmatpush3.bf16.msra.mxu0 %v1888_v0 }
  0x53   : > { %1707 = vmatprep.subr.bf16.mxu0 %v1890_v1  ;;  %1728 = vmatpush3.bf16.msra.mxu1 %v1889_v2 }
  0x54   : > { %1729 = vmatprep.subr.bf16.mxu1 %v1891_v3 }
  0x56   : > { %1708 = vmatpush3.bf16.msra.mxu0 %v1892_v4 }
  0x57   : > { %1709 = vmatprep.subr.bf16.mxu0 %v1894_v5  ;;  %1730 = vmatpush3.bf16.msra.mxu1 %v1893_v6 }
  0x58   : > { %1731 = vmatprep.subr.bf16.mxu1 %v1895_v7 }
  0x5a   : > { %1710 = vmatpush3.bf16.msra.mxu0 %v1896_v8 }
  0x5b   : > { %1711 = vmatprep.subr.bf16.mxu0 %v1898_v9  ;;  %1732 = vmatpush3.bf16.msra.mxu1 %v1897_v10 }
  0x5c   : > { %1733 = vmatprep.subr.bf16.mxu1 %v1899_v11 }
  0x5e   : > { %1712 = vmatpush3.bf16.msra.mxu0 %v1900_v12 }
  0x5f   : > { %1713 = vmatprep.subr.bf16.mxu0 %v1902_v13  ;;  %1734 = vmatpush3.bf16.msra.mxu1 %v1901_v14 }
  0x60   : > { %1735 = vmatprep.subr.bf16.mxu1 %v1903_v15 }
  0x62   : > { %1714 = vmatpush3.bf16.msra.mxu0 %v1904_v16 }
  0x63   : > { %1736 = vmatpush3.bf16.msra.mxu1 %v1905_v18 }
  0x65   : > { %1084 = vmatmul.mubr.bf16.vlgmr.msra.gmra.mxu0 %v560_v17 }
  0x66   : > { %1124 = vmatmul.mubr.bf16.vlgmr.msra.gmra.mxu1 %v576_v19 }
 0x105   : > { %v1671_v20 = vpop.f32.mrf.mxu0 }
 0x106   : > { %v1693_v21 = vpop.f32.mrf.mxu1 }
 0x107   : > { %v1672_v22 = vpop.f32.mrf.mxu0 }
 0x108   : > { %v1694_v23 = vpop.f32.mrf.mxu1  ;;  %v1673_v28 = vadd.f32 %v1672_v22, %v1671_v20 }
 0x109   : > { %v1674_v24 = vpop.f32.mrf.mxu0  ;;  %v1695_v31 = vadd.f32 %v1694_v23, %v1693_v21 }
 0x10a   : > { %v1696_v25 = vpop.f32.mrf.mxu1  ;;  %v1006_v30 = vadd.f32 %v1673_v28, %v1560_v29 }
 0x10b   : > { %v1675_v26 = vpop.f32.mrf.mxu0 }
 0x10c   : > { %v1697_v27 = vpop.f32.mrf.mxu1  ;;  %v1046_v35 = vadd.f32 %v1695_v31, %v1006_v30 }
 0x125   : > { %v1715_v32 = vpop.f32.mrf.mxu0 }
 0x126   : > { %v1737_v33 = vpop.f32.mrf.mxu1 }
 0x127   : > { %v1716_v34 = vpop.f32.mrf.mxu0 }
 0x128   : > { %v1717_v36 = vadd.f32 %v1716_v34, %v1715_v32  ;;  %v1738_v37 = vpop.f32.mrf.mxu1 }
 0x129   : > { %v1718_v38 = vpop.f32.mrf.mxu0  ;;  %v1739_v40 = vadd.f32 %v1738_v37, %v1737_v33 }
 0x12a   : > { %v1086_v39 = vadd.f32 %v1717_v36, %v1046_v35  ;;  %v1740_v41 = vpop.f32.mrf.mxu1 }
 0x12b   : > { %v1719_v42 = vpop.f32.mrf.mxu0 }
 0x12c   : > { %v1126_v43 = vadd.f32 %v1739_v40, %v1086_v39  ;;  %v1741_v44 = vpop.f32.mrf.mxu1 }
 0x12e   : > { %v1131_v45 = vmax.f32 %v1126_v43, 0.0 }
 0x130   : > { %v1147_v46 = vpack.c.bf16 %v1131_v45, %v1131_v45  ;;  %v1132_v47 = vmul.f32 %v1131_v45, %v1131_v45 }
 0x132   : > { %1148 = vst [vmem:[#allocation2] sm:$0x1] %v1147_v46  ;;  %v1134_v48 = vsel %vm1133_vm0, %v1132_v47, 0.0 }
 0x133   : > { %1135 = vadd.xlane.f32.xlu0 %v1134_v48 }
 0x1bc   : > { %v1136_v49 = vpop.xlane.xlu0 %1135 }
 0x1bd   : > { %v1137_v50 = vrot.slane %v1136_v49, 4 }
 0x1bf   : > { %v1138_v51 = vadd.f32 %v1137_v50, %v1136_v49 }
 0x1c1   : > { %v1139_v52 = vrot.slane %v1138_v51, 2 }
 0x1c3   : > { %v1140_v53 = vadd.f32 %v1139_v52, %v1138_v51 }
 0x1c5   : > { %v1141_v54 = vrot.slane %v1140_v53, 1 }
 0x1c7   : > { %v1142_v55 = vadd.f32 %v1141_v54, %v1140_v53 }
 0x1c9   : > { %1801 = vpush %v1142_v55 }
 0x1fa   : > { %s1802_s12 = spop %1801 }
 0x1fb   : > { %s1144_s13 = smul.f32 0.015625, %s1802_s12 }
 0x1fd   : > { %1146 = sst [smem:[#allocation3]] %s1144_s13 }
 0x1fe PF: > { %p1625_p3 = scmp.le.s32.totalorder %s2059_s10, 0 }
 0x1ff   : > { %s1266_s16 = sld [smem:[#allocation3]] (!%p1625_p3) }
 0x200   : > { %1152 = sbr.rel (%p1625_p3) target bundleno = 955 (0x3bb), region = 64 }
 0x205   : > { %v1906_v56 = vld [vmem:[%s2093_s26 + $0x38] sm:$0xff]   ;;  %v1997_v57 = vmov 0.0   ;;  %v1907_v58 = vld [vmem:[%s2093_s26 + $0x30] sm:$0xff]   ;;  %vm1998_vm1 = vmmov 0   ;;  %v1908_v59 = vld [vmem:[%s2093_s26 + $0x28] sm:$0xff]   ;;  %vm1268_vm2 = vcmask 1041408  }
 0x206   : > { %1761 = vmatprep.subr.bf16.mxu0 %v1997_v57  ;;  %1777 = vmatprep.mubr.msk.bf16.mxu0 %vm1998_vm1, %v1997_v57  ;;  %v1909_v60 = vld [vmem:[%s2093_s26 + $0x20] sm:$0xff]   ;;  %v1910_v61 = vld [vmem:[%s2093_s26 + $0x18] sm:$0xff]   ;;  %v1911_v62 = vld [vmem:[%s2093_s26 + $0x10] sm:$0xff]  }
 0x207   : > { %1762 = vmatpush3.bf16.msra.mxu0 %v1906_v56  ;;  %v1912_v63 = vld [vmem:[%s2093_s26 + $0x8] sm:$0xff]   ;;  %v1913_v0 = vld [vmem:[%s2093_s26] sm:$0xff]  }
 0x208   : > { %1763 = vmatprep.subr.bf16.mxu0 %v1997_v57  ;;  %v1153_v1 = vld [vmem:[#allocation2] sm:$0x1] }
 0x209   : > { %v1626_v2 = vld [vmem:[%s384_s23] ss:$0 sm:$0xff] }
 0x20b   : > { %1764 = vmatpush3.bf16.msra.mxu0 %v1907_v58 }
 0x20c   : > { %1765 = vmatprep.subr.bf16.mxu0 %v1997_v57 }
 0x20f   : > { %1766 = vmatpush3.bf16.msra.mxu0 %v1908_v59 }
 0x210   : > { %1767 = vmatprep.subr.bf16.mxu0 %v1997_v57 }
 0x213   : > { %1768 = vmatpush3.bf16.msra.mxu0 %v1909_v60 }
 0x214   : > { %1769 = vmatprep.subr.bf16.mxu0 %v1997_v57 }
 0x217   : > { %1770 = vmatpush3.bf16.msra.mxu0 %v1910_v61 }
 0x218   : > { %1771 = vmatprep.subr.bf16.mxu0 %v1997_v57 }
 0x21b   : > { %1772 = vmatpush3.bf16.msra.mxu0 %v1911_v62 }
 0x21c   : > { %1773 = vmatprep.subr.bf16.mxu0 %v1997_v57 }
 0x21f   : > { %1774 = vmatpush3.bf16.msra.mxu0 %v1912_v63 }
 0x220   : > { %1775 = vmatprep.subr.bf16.mxu0 %v1997_v57 }
 0x223   : > { %1776 = vmatpush3.bf16.msra.mxu0 %v1913_v0 }
 0x226   : > { %1778 = vmatmul.mubr.bf16.vlgmr.msra.gmra.mxu0 %v1153_v1 }
 0x2e6   : > { %v1259_v3 = vpop.f32.mrf.mxu0 }
 0x2e7   : > { %v1260_v4 = vadd.f32 %v1626_v2, %v1259_v3 }
 0x2e8   : > { %v1779_v5 = vpop.f32.mrf.mxu0 }
 0x2e9   : > { %v1265_v6 = vmax.f32 %v1260_v4, 0.0 }
 0x2ea   : > { %v1262_v7 = vpop.f32.mrf.mxu0 }
 0x2eb   : > { %v1283_v8 = vpack.c.bf16 %v1265_v6, %v1265_v6  ;;  %v1267_v9 = vmul.f32 %v1265_v6, %v1265_v6 }
 0x2ec   : > { %v1780_v10 = vpop.f32.mrf.mxu0 }
 0x2ed   : > { %1284 = vst [vmem:[#allocation2] sm:$0x1] %v1283_v8  ;;  %v1269_v11 = vsel %vm1268_vm2, %v1267_v9, 0.0 }
 0x2ee   : > { %1270 = vadd.xlane.f32.xlu0 %v1269_v11 }
 0x377   : > { %v1271_v12 = vpop.xlane.xlu0 %1270 }
 0x378   : > { %v1272_v13 = vrot.slane %v1271_v12, 4 }
 0x37a   : > { %v1273_v14 = vadd.f32 %v1272_v13, %v1271_v12 }
 0x37c   : > { %v1274_v15 = vrot.slane %v1273_v14, 2 }
 0x37e   : > { %v1275_v16 = vadd.f32 %v1274_v15, %v1273_v14 }
 0x380   : > { %v1276_v17 = vrot.slane %v1275_v16, 1 }
 0x382   : > { %v1277_v18 = vadd.f32 %v1276_v17, %v1275_v16 }
 0x384   : > { %1803 = vpush %v1277_v18 }
 0x3b5   : > { %s1804_s17 = spop %1803 }
 0x3b6   : > { %s1279_s18 = smul.f32 0.015625, %s1804_s17 }
 0x3b8   : > { %s1280_s19 = sadd.f32 %s1279_s18, %s1266_s16 }
 0x3ba   : > { %1282 = sst [smem:[#allocation3]] %s1280_s19 }
 0x3bb PF: > { %p1635_p4 = scmp.ne.s32.totalorder %s2059_s10, 2 }
 0x3bc   : > { %s1447_s21 = sld [smem:[#allocation3]] (!%p1635_p4) }
 0x3bd   : > { %1288 = sbr.rel (%p1635_p4) target bundleno = 1719 (0x6b7), region = 68 }
 0x3c2   : > { %v1915_v19 = vld [vmem:[%s2187_s5 + $0x38] sm:$0xff]   ;;  %v1999_v20 = vmov 0.0   ;;  %v1916_v21 = vld [vmem:[%s2187_s5 + $0x30] sm:$0xff]   ;;  %vm2000_vm3 = vmmov 0   ;;  %v1917_v22 = vld [vmem:[%s2187_s5 + $0x28] sm:$0xff]   ;;  %v2001_v29 = vmov 0   ;;  %v1402_v30 = vlaneseq }
 0x3c3   : > { %1781 = vmatprep.subr.bf16.mxu0 %v1999_v20  ;;  %1797 = vmatprep.mubr.msk.bf16.mxu0 %vm2000_vm3, %v1999_v20  ;;  %v1918_v23 = vld [vmem:[%s2187_s5 + $0x20] sm:$0xff]   ;;  %v1919_v24 = vld [vmem:[%s2187_s5 + $0x18] sm:$0xff]   ;;  %v1920_v25 = vld [vmem:[%s2187_s5 + $0x10] sm:$0xff]   ;;  %vm1408_vm5 = vcmask 1041408   ;;  %vm1433_vm7 = vcmask 1024   ;;  %v1451_v0 = vstv %s1447_s21 }
 0x3c4   : > { %1782 = vmatpush3.bf16.msra.mxu0 %v1915_v19  ;;  %v1921_v26 = vld [vmem:[%s2187_s5 + $0x8] sm:$0xff]   ;;  %v1922_v27 = vld [vmem:[%s2187_s5] sm:$0xff]   ;;  %1914 = vset.pattern.permute.xlu0 %v2001_v29  ;;  %v1403_v31 = vand.u32 127, %v1402_v30 }
 0x3c5   : > { %1783 = vmatprep.subr.bf16.mxu0 %v1999_v20  ;;  %v1289_v28 = vld [vmem:[#allocation2] sm:$0x1] }
 0x3c6   : > { %v1636_v32 = vld [vmem:[%s2188_s6] ss:$0 sm:$0xff]  ;;  %vm1404_vm4 = vcmp.lt.s32.totalorder %v1403_v31, 10  ;;  %vm1450_vm8 = vcmp.eq.s32.totalorder %v1403_v31, 0  ;;  %vm1453_vm9 = vcmp.eq.s32.totalorder %v1403_v31, 1  ;;  %vm1457_vm10 = vcmp.eq.s32.totalorder %v1403_v31, 2 }
 0x3c7   : > { %v1421_v40 = vld [vmem:[%s2189_s7] sm:$0x3]  ;;  %v1452_v2 = vsel %vm1450_vm8, %v1451_v0, 0.0 }
 0x3c8   : > { %1784 = vmatpush3.bf16.msra.mxu0 %v1916_v21 }
 0x3c9   : > { %1785 = vmatprep.subr.bf16.mxu0 %v1999_v20 }
 0x3cc   : > { %1786 = vmatpush3.bf16.msra.mxu0 %v1917_v22 }
 0x3cd   : > { %1787 = vmatprep.subr.bf16.mxu0 %v1999_v20 }
 0x3d0   : > { %1788 = vmatpush3.bf16.msra.mxu0 %v1918_v23 }
 0x3d1   : > { %1789 = vmatprep.subr.bf16.mxu0 %v1999_v20 }
 0x3d4   : > { %1790 = vmatpush3.bf16.msra.mxu0 %v1919_v24 }
 0x3d5   : > { %1791 = vmatprep.subr.bf16.mxu0 %v1999_v20 }
 0x3d8   : > { %1792 = vmatpush3.bf16.msra.mxu0 %v1920_v25 }
 0x3d9   : > { %1793 = vmatprep.subr.bf16.mxu0 %v1999_v20 }
 0x3dc   : > { %1794 = vmatpush3.bf16.msra.mxu0 %v1921_v26 }
 0x3dd   : > { %1795 = vmatprep.subr.bf16.mxu0 %v1999_v20 }
 0x3e0   : > { %1796 = vmatpush3.bf16.msra.mxu0 %v1922_v27 }
 0x3e3   : > { %1798 = vmatmul.mubr.bf16.vlgmr.msra.gmra.mxu0 %v1289_v28 }
 0x4a3   : > { %v1395_v33 = vpop.f32.mrf.mxu0 }
 0x4a4   : > { %v1396_v34 = vadd.f32 %v1636_v32, %v1395_v33 }
 0x4a5   : > { %v1799_v35 = vpop.f32.mrf.mxu0 }
 0x4a6   : > { %1401 = vst [vmem:[#allocation7] sm:$0x3] %v1396_v34  ;;  %v1407_v36 = vsel %vm1404_vm4, %v1396_v34, -1e+30 }
 0x4a7   : > { %v1398_v37 = vpop.f32.mrf.mxu0  ;;  %v1409_v38 = vsel %vm1408_vm5, %v1407_v36, -inf }
 0x4a8   : > { %1410 = vmax.xlane.f32.xlu0 %v1409_v38 }
 0x4a9   : > { %v1800_v39 = vpop.f32.mrf.mxu0 }
 0x4be   : > { %1423 = vperm.xlu0 %1914, %v1421_v40  }
 0x531   : > { %v1411_v41 = vpop.xlane.xlu0 %1410 }
 0x532   : > { %v1412_v42 = vsub.f32 %v1407_v36, %v1411_v41 }
 0x534   : > { %v1413_v43 = vmul.f32 1.442695, %v1412_v42 }
 0x536   : > { %1923 = vpow2.f32 %v1413_v43 }
 0x539   : > { %v1424_v44 = vpop.permute.xlu0 %1423 }
 0x53a   : > { %vm1425_vm6 = vcmp.eq.s32.totalorder %v1403_v31, %v1424_v44 }
 0x53b   : > { %v1645_v45 = vsel %vm1425_vm6, 1.0, %v1999_v20 }
 0x53c   : > { %v1428_v48 = vmul.f32 %v1645_v45, %v1396_v34 }
 0x53e   : > { %v1429_v49 = vsel %vm1408_vm5, %v1428_v48, 0.0 }
 0x543   : > { %v1924_v46 = vpop.eup %1923 }
 0x544   : > { %v1415_v47 = vsel %vm1408_vm5, %v1924_v46, 0.0 }
 0x545   : > { %1416 = vadd.xlane.f32.xlu1 %v1415_v47 }
 0x549   : > { %1430 = vadd.xlane.f32.xlu1 %v1429_v49 }
 0x5ce   : > { %v1417_v50 = vpop.xlane.xlu1 %1416 }
 0x5cf   : > { %1925 = vlog2.f32 %v1417_v50 }
 0x5d2   : > { %v1431_v54 = vpop.xlane.xlu1 %1430 }
 0x5dc   : > { %v1926_v51 = vpop.eup %1925 }
 0x5dd   : > { %v1419_v52 = vmul.f32 0.6931472, %v1926_v51 }
 0x5df   : > { %v1420_v53 = vadd.f32 %v1419_v52, %v1411_v41 }
 0x5e1   : > { %v1432_v55 = vsub.f32 %v1420_v53, %v1431_v54 }
 0x5e3   : > { %v1434_v56 = vsel %vm1433_vm7, %v1432_v55, 0.0 }
 0x5e4   : > { %1435 = vadd.xlane.f32.xlu1 %v1434_v56 }
 0x66d   : > { %v1436_v57 = vpop.xlane.xlu1 %1435 }
 0x66e   : > { %v1437_v58 = vrot.slane %v1436_v57, 4 }
 0x670   : > { %v1438_v59 = vadd.f32 %v1437_v58, %v1436_v57 }
 0x672   : > { %v1439_v60 = vrot.slane %v1438_v59, 2 }
 0x674   : > { %v1440_v61 = vadd.f32 %v1439_v60, %v1438_v59 }
 0x676   : > { %v1441_v62 = vrot.slane %v1440_v61, 1 }
 0x678   : > { %v1442_v63 = vadd.f32 %v1441_v62, %v1440_v61 }
 0x67a   : > { %1805 = vpush %v1442_v63 }
 0x6ab   : > { %s1806_s22 = spop %1805 }
 0x6ac   : > { %s1446_s23 = smul.f32 0.5, %s1806_s22 }
 0x6ae   : > { %s1448_s24 = ssub.f32 %s1447_s21, %s1446_s23  ;;  %v1454_v1 = vstv %s1446_s23 }
 0x6af   : > { %v1455_v3 = vsel %vm1453_vm9, %v1454_v1, 0.0 }
 0x6b0   : > { %s1449_s25 = smul.f32 %s1448_s24, %s1448_s24  ;;  %v1456_v4 = vadd.f32 %v1455_v3, %v1452_v2 }
 0x6b2   : > { %v1458_v5 = vstv %s1449_s25 }
 0x6b3   : > { %v1459_v6 = vsel %vm1457_vm10, %v1458_v5, 0.0 }
 0x6b4   : > { %v1460_v7 = vadd.f32 %v1459_v6, %v1456_v4 }
 0x6b6   : > { %1461 = vst [vmem:[%s2191_s9] sm:$0x1] %v1460_v7 }
 0x6b7 PF: > { %p1821_p5 = scmp.eq.s32.totalorder %s2059_s10, 2  ;;  %s2002_s28 = smov [#allocation7]  }
 0x6b8   : > { %s1469_s29 = sshll.u32 %s2002_s28, 4  ;;  %s1470_s29 = int_to_ptr.vmem [resolvable:$true] %s1469_s29 }
 0x6b9   : > { %s1953_s11 = scalar_lea.vmem %s1470_s29, 32  ;;  %p1960_p9 = scmp.lt.s32.totalorder %s1470_s29, %s1470_s29 }
 0x6ba   : > { %p1954_p6 = scmp.ne.s32.totalorder %s1470_s29, %s1953_s11  ;;  %p1961_p10 = scmp.lt.s32.totalorder %s1953_s11, %s1953_s11 }
 0x6bc   : > { %p1955_p7 = pnand %p1954_p6, %p1821_p5  ;;  %p1962_p11 = por %p1961_p10, %p1960_p9 }
 0x6be   : > { %p1956_p8 = pneg %p1955_p7 }
 0x6c0   : > { %p1963_p12 = pnand %p1962_p11, %p1956_p8 }
 0x6c2   : > { %1966 = shalt.err (!%p1963_p12)
}
 0x6c3   : > { %1812 = dma.vmem_to_hbm [thread:$0]  (%p1821_p5), %s1470_s29, 32, %s2190_s8, [#allocation6]  }
 0x6c4   : > { %1986 = dma.done.wait (%p1821_p5), [#allocation6], 32  }
 0x6c5   : > { %1988 = vsyncadd (%p1821_p5), [#allocation6], 4294967264 }
 0x6c6 PF: > { %s22_s30 = sadd.s32 1, %s1991_s30  }
 0x6c7   : > { %p19_p13 = scmp.ge.s32.totalorder %s22_s30, 5  }
 0x6c9   :  { %21 = sbr.rel (!%p19_p13) target bundleno = 2 (0x2), region = 109 }
 0x6ce   :  { %1488 = vsyncpa [#allocation5], 1 }
 0x6cf   :  { %1490 = vsyncpa [#allocation5 + $0x1], 1 }
 0x6d0   :  { %1491 = vsyncpa [#allocation6], 1 }
 0x6d1   :  { %1493 = vsyncpa [#allocation6 + $0x1], 1 }

</bundles_post_ra>
